<compile_context>
chip_gen: v7x
topology: tpu7x:2x2x1
jax: 0.10.0
libtpu: 0.0.40
codegen_flags: <defaults>
</compile_context>

<pallas_src>
import functools

import numpy as np
import jax
import jax.numpy as jnp
from jax.experimental import pallas as pl
from jax.experimental.pallas import tpu as pltpu


# ---------------------------------------------------------------------------
# Constant construction (hoisted out of the per-call path).
# ---------------------------------------------------------------------------
def _interp_matrix_np(out_size, in_size, scale_factor):
    """Row-interpolation matrix matching F.interpolate(mode='bilinear',
    align_corners=False) along one axis. Shape (out_size, in_size)."""
    dst = np.arange(out_size, dtype=np.float64)
    src = (dst + 0.5) / float(scale_factor) - 0.5
    src = np.maximum(src, 0.0)                    # PyTorch clamps negative src to 0
    i0 = np.minimum(np.floor(src).astype(np.int64), in_size - 1)
    i1 = np.minimum(i0 + 1, in_size - 1)
    w1 = src - i0.astype(np.float64)
    w0 = 1.0 - w1
    m = np.zeros((out_size, in_size), dtype=np.float64)
    m[np.arange(out_size), i0] += w0
    m[np.arange(out_size), i1] += w1
    return m


@functools.lru_cache(maxsize=None)
def _kron_upsample_matrix(h, w, scale_factor):
    """K with out_flat = y_flat @ K; shape (H*W, H_out*W_out), float32, cached."""
    ah = _interp_matrix_np(h * scale_factor, h, scale_factor)    # (H_out, H)
    aw = _interp_matrix_np(w * scale_factor, w, scale_factor)    # (W_out, W)
    k = np.kron(ah, aw).T.astype(np.float32)                     # (H*W, H_out*W_out)
    return jnp.asarray(k)


def _detect_num_tensorcores():
    """TensorCores per chip (2 on v7x, else 1). Conservative fallback to 1
    (correct everywhere; only a perf miss on v7x)."""
    try:
        info = pltpu.get_tpu_info()
        for name in ("num_cores", "core_count", "num_tensorcores",
                     "tensor_cores_per_chip", "cores_per_chip"):
            v = getattr(info, name, None)
            if isinstance(v, int) and v > 0:
                return int(v)
    except Exception:
        pass
    return 1


# ---------------------------------------------------------------------------
# Kernel: two matmuls, pure MXU.
# ---------------------------------------------------------------------------
def _decoder2_kernel(w_ref, x_ref, k_ref, o_ref):
    # w_ref: (N*C_out, N*C_in+1)  block-diag 1x1-conv weight with bias column
    # x_ref: (N*C_in+1, H*W)      stacked batch with trailing ones row
    # k_ref: (H*W, lane_block)    slice of the Kron interpolation matrix
    # o_ref: (N*C_out, lane_block)
    y = jnp.dot(w_ref[...], x_ref[...], preferred_element_type=jnp.float32)
    o_ref[...] = jnp.dot(y, k_ref[...],
                         preferred_element_type=jnp.float32).astype(o_ref.dtype)


@functools.partial(jax.jit, static_argnames=("scale_factor", "num_tensorcores"))
def _decoder2_forward_jit(x, conv_w, conv_b, *, scale_factor, num_tensorcores):
    n, c_in, h, w = x.shape
    c_out = conv_w.shape[0]
    h_out, w_out = h * scale_factor, w * scale_factor
    hw, hw_out = h * w, h_out * w_out

    # Constant upsample matrix (cached / constant-folded under jit).
    kmat = _kron_upsample_matrix(h, w, scale_factor)             # (HW, HW_out)

    # Block-diagonal weight with bias folded in as an extra contraction column.
    w2d = conv_w.reshape(c_out, c_in).astype(jnp.float32)
    w_block = jnp.kron(jnp.eye(n, dtype=jnp.float32), w2d)       # (N*C_out, N*C_in)
    b_col = jnp.tile(conv_b.astype(jnp.float32).reshape(c_out, 1), (n, 1))
    w_aug = jnp.concatenate([w_block, b_col], axis=1)            # (N*C_out, N*C_in+1)

    # Stacked input with the ones row that activates the bias column.
    x2 = x.astype(jnp.float32).reshape(n * c_in, hw)
    x_aug = jnp.concatenate([x2, jnp.ones((1, hw), jnp.float32)], axis=0)

    # Lane-axis split across TensorCores (v7x); single step otherwise.
    if num_tensorcores > 1 and hw_out % (128 * num_tensorcores) == 0:
        lane_splits = num_tensorcores
    else:
        lane_splits = 1
    lane_block = hw_out // lane_splits

    rows_out = n * c_out
    rows_in = n * c_in + 1

    out2 = pl.pallas_call(
        _decoder2_kernel,
        out_shape=jax.ShapeDtypeStruct((rows_out, hw_out), jnp.float32),
        grid_spec=pltpu.PrefetchScalarGridSpec(
            num_scalar_prefetch=0,
            grid=(lane_splits,),
            in_specs=[
                pl.BlockSpec((rows_out, rows_in), lambda j: (0, 0)),
                pl.BlockSpec((rows_in, hw), lambda j: (0, 0)),
                pl.BlockSpec((hw, lane_block), lambda j: (0, j)),
            ],
            out_specs=pl.BlockSpec((rows_out, lane_block), lambda j: (0, j)),
        ),
        compiler_params=pltpu.CompilerParams(dimension_semantics=("parallel",)),
    )(w_aug, x_aug, kmat)

    # (N*C_out, H_out*W_out) rows are (n, c_out)-ordered -> free contiguous reshape.
    return out2.reshape(n, c_out, h_out, w_out)


def decoder2_forward(x, conv_w, conv_b, scale_factor=8, num_tensorcores=None):
    if num_tensorcores is None:
        num_tensorcores = _detect_num_tensorcores()
    return _decoder2_forward_jit(x, conv_w, conv_b,
                                 scale_factor=int(scale_factor),
                                 num_tensorcores=int(num_tensorcores))


# ---------------------------------------------------------------------------
# Pure-JAX reference (same math as the PyTorch forward).
# ---------------------------------------------------------------------------
def decoder2_ref(x, conv_w, conv_b, scale_factor=8):
    n, c_in, h, w = x.shape
    c_out = conv_w.shape[0]
    y = jnp.einsum("nchw,oc->nohw", x, conv_w.reshape(c_out, c_in)) \
        + conv_b[None, :, None, None]
    ah = jnp.asarray(_interp_matrix_np(h * scale_factor, h, scale_factor), jnp.float32)
    aw = jnp.asarray(_interp_matrix_np(w * scale_factor, w, scale_factor), jnp.float32)
    return jnp.einsum("Hh,nohw,Ww->noHW", ah, y, aw)


if __name__ == "__main__":
    key = jax.random.PRNGKey(0)
    k1, k2, k3 = jax.random.split(key, 3)

    # Shapes consistent with Decoder2(max_label=8, embd_dim=32, scale_factor=8)
    N, C_in, H, W = 2, 32, 4, 4
    max_label = 8
    scale_factor = 8

    x = jax.random.normal(k1, (N, C_in, H, W), jnp.float32)
    # nn.Conv2d(embd_dim, max_label, 1): weight (max_label, embd_dim, 1, 1), bias (max_label,)
    bound = 1.0 / (C_in ** 0.5)
    conv_w = jax.random.uniform(k2, (max_label, C_in, 1, 1), jnp.float32, -bound, bound)
    conv_b = jax.random.uniform(k3, (max_label,), jnp.float32, -bound, bound)

    out = decoder2_forward(x, conv_w, conv_b, scale_factor=scale_factor)
    out = jax.block_until_ready(out)

    ref = decoder2_ref(x, conv_w, conv_b, scale_factor)
    assert out.shape == (N, max_label, H * scale_factor, W * scale_factor), out.shape
    assert jnp.allclose(out, ref, atol=1e-4, rtol=1e-4), float(jnp.max(jnp.abs(out - ref)))
    print("KERNEL_OK")
</pallas_src>

<mosaic_0001>
module attributes {stable_mosaic.version = 11 : i64} {
  func.func @_decoder2_kernel(%arg0: i32, %arg1: memref<16x65xf32, #tpu.memory_space<vmem>>, %arg2: memref<65x16xf32, #tpu.memory_space<vmem>>, %arg3: memref<16x1024xf32, #tpu.memory_space<vmem>>, %arg4: memref<16x1024xf32, #tpu.memory_space<vmem>>) attributes {dimension_semantics = [#tpu.dimension_semantics<parallel>], iteration_bounds = array<i64: 1>, scalar_prefetch = 0 : i64, scratch_operands = 0 : i64, tpu.core_type = #tpu.core_type<tc>, window_params = [{pipeline_mode = #tpu.pipeline_mode<synchronous>, transform_indices = @transform_0, window_bounds = array<i64: 16, 65>}, {pipeline_mode = #tpu.pipeline_mode<synchronous>, transform_indices = @transform_1, window_bounds = array<i64: 65, 16>}, {transform_indices = @transform_2, window_bounds = array<i64: 16, 1024>}, {transform_indices = @transform_3, window_bounds = array<i64: 16, 1024>}]} {
    %c0 = arith.constant 0 : index
    %c0_0 = arith.constant 0 : index
    %0 = vector.load %arg1[%c0, %c0_0] : memref<16x65xf32, #tpu.memory_space<vmem>>, vector<16x65xf32>
    %c0_1 = arith.constant 0 : index
    %c0_2 = arith.constant 0 : index
    %1 = vector.load %arg2[%c0_1, %c0_2] : memref<65x16xf32, #tpu.memory_space<vmem>>, vector<65x16xf32>
    %cst = arith.constant dense<0.000000e+00> : vector<16x16xf32>
    %2 = tpu.matmul %0, %1, %cst {dimension_numbers = #tpu.dot_dimension_numbers<[1], [0], [0], [1], [0, 0, 1, 1], [], []>} : vector<16x65xf32>, vector<65x16xf32>, vector<16x16xf32> -> vector<16x16xf32>
    %c0_3 = arith.constant 0 : index
    %c0_4 = arith.constant 0 : index
    %3 = vector.load %arg3[%c0_3, %c0_4] : memref<16x1024xf32, #tpu.memory_space<vmem>>, vector<16x1024xf32>
    %cst_5 = arith.constant dense<0.000000e+00> : vector<16x1024xf32>
    %4 = tpu.matmul %2, %3, %cst_5 {dimension_numbers = #tpu.dot_dimension_numbers<[1], [0], [0], [1], [0, 0, 1, 1], [], []>} : vector<16x16xf32>, vector<16x1024xf32>, vector<16x1024xf32> -> vector<16x1024xf32>
    %c0_6 = arith.constant 0 : index
    %c0_7 = arith.constant 0 : index
    %5 = vector.load %arg4[%c0_6, %c0_7] : memref<16x1024xf32, #tpu.memory_space<vmem>>, vector<16x1024xf32>
    tpu.vector_store %arg4[%c0_6, %c0_7], %4 {strides = array<i32>} : memref<16x1024xf32, #tpu.memory_space<vmem>>, vector<16x1024xf32>,
    return
  }
  func.func @transform_0(%arg0: i32) -> (i32, i32) {
    %c0_i32 = arith.constant 0 : i32
    %c0_i32_0 = arith.constant 0 : i32
    %c0_i32_1 = arith.constant 0 : i32
    return %c0_i32, %c0_i32_0 : i32, i32
  }
  func.func @transform_1(%arg0: i32) -> (i32, i32) {
    %c0_i32 = arith.constant 0 : i32
    %c0_i32_0 = arith.constant 0 : i32
    %c0_i32_1 = arith.constant 0 : i32
    return %c0_i32, %c0_i32_0 : i32, i32
  }
  func.func @transform_2(%arg0: i32) -> (i32, i32) {
    %c0_i32 = arith.constant 0 : i32
    %c0_i32_0 = arith.constant 0 : i32
    return %c0_i32, %arg0 : i32, i32
  }
  func.func @transform_3(%arg0: i32) -> (i32, i32) {
    %c0_i32 = arith.constant 0 : i32
    %c0_i32_0 = arith.constant 0 : i32
    return %c0_i32, %arg0 : i32, i32
  }
}

</mosaic_0001>

<bundles_post_ra>
// kernel: _decoder2_forward_jit.1
= control target key start
LH: loop header
LB: loop body
LE: loop exit
PB: predicated region body
PF: predicated region fallthrough
CT: control target
= control target key end

     0   :  { %vm25_vm0 = vcmask 531456   ;;  %vm32_vm1 = vcmask 1040384   ;;  %v538_v27 = vmov 0.0   ;;  %vm127_vm2 = vcmask 130048   ;;  %s698_s1 = inlined_call_operand.vmem [shape: f32[65,16], index: 1, kind: input, shape index: {}]   ;;  %s699_s0 = inlined_call_operand.vmem [shape: f32[16,65], index: 0, kind: input, shape index: {}]   ;;  %s700_s2 = inlined_call_operand.vmem [shape: f32[16,1024], index: 2, kind: input, shape index: {}]   ;;  %s701_s3 = inlined_call_operand.vmem [shape: f32[16,1024], index: 3, kind: output, shape index: {}]  }
   0x1   :  { %v16_v0 = vld [vmem:[%s698_s1] sm:$0xff]  ;;  %v17_v1 = vld [vmem:[%s698_s1 + $0x8] sm:$0xff]  ;;  %v18_v2 = vld [vmem:[%s698_s1 + $0x10] sm:$0xff]  ;;  %198 = vmatprep.mubr.f32.mxu1 %v538_v27 }
   0x2   :  { %v505_v3 = vpack.c.bf16 %v17_v1, %v16_v0  ;;  %v19_v4 = vld [vmem:[%s698_s1 + $0x18] sm:$0xff]  ;;  %v20_v6 = vld [vmem:[%s698_s1 + $0x20] sm:$0xff]  ;;  %v21_v7 = vld [vmem:[%s698_s1 + $0x28] sm:$0xff] }
   0x3   :  { %v509_v5 = vpack.c.bf16 %v19_v4, %v18_v2  ;;  %v14_v8 = vld [vmem:[%s699_s0] sm:$0xff]  ;;  %v112_v9 = vld [vmem:[%s700_s2 + $0x8] sm:$0xff]  ;;  %v513_v13 = vpack.c.bf16 %v21_v7, %v20_v6  ;;  %v22_v16 = vld [vmem:[%s698_s1 + $0x30] sm:$0xff] }
   0x4   :  { %506 = vmatprep.subr.bf16.mxu0 %v505_v3  ;;  %502 = vmatprep.mubr.msk.f32.mxu0 %vm25_vm0, %v14_v8  ;;  %v120_v10 = vld [vmem:[%s700_s2 + $0x48] sm:$0xff]  ;;  %v111_v11 = vld [vmem:[%s700_s2] sm:$0xff]  ;;  %v23_v17 = vld [vmem:[%s698_s1 + $0x38] sm:$0xff] }
   0x5   :  { %508 = vmatpush3.bf16.msra.mxu0 %v505_v3  ;;  %v119_v12 = vld [vmem:[%s700_s2 + $0x40] sm:$0xff]  ;;  %v521_v14 = vpack.c.bf16 %v120_v10, %v112_v9  ;;  %v517_v18 = vpack.c.bf16 %v23_v17, %v22_v16  ;;  %v118_v20 = vld [vmem:[%s700_s2 + $0x38] sm:$0xff]  ;;  %v117_v22 = vld [vmem:[%s700_s2 + $0x30] sm:$0xff] }
   0x6   :  { %510 = vmatprep.subr.bf16.mxu0 %v509_v5  ;;  %v523_v15 = vpack.c.bf16 %v119_v12, %v111_v11  ;;  %v24_v19 = vld [vmem:[%s698_s1 + $0x40] sm:$0x1]  ;;  %v126_v21 = vld [vmem:[%s700_s2 + $0x78] sm:$0xff]  ;;  %v125_v23 = vld [vmem:[%s700_s2 + $0x70] sm:$0xff] }
   0x7   :  { %522 = vmatprep.subr.bf16.mxu1 %v521_v14  ;;  %v533_v24 = vpack.c.bf16 %v126_v21, %v118_v20  ;;  %v15_v25 = vld [vmem:[%s699_s0 + $0x8] sm:$0xff]  ;;  %v535_v26 = vpack.c.bf16 %v125_v23, %v117_v22  ;;  %v114_v28 = vld [vmem:[%s700_s2 + $0x18] sm:$0xff]  ;;  %v113_v31 = vld [vmem:[%s700_s2 + $0x10] sm:$0xff] }
   0x8   :  { %524 = vmatpush1.bf16.msra.mxu1 %v523_v15  ;;  %v122_v29 = vld [vmem:[%s700_s2 + $0x58] sm:$0xff]  ;;  %v121_v32 = vld [vmem:[%s700_s2 + $0x50] sm:$0xff]  ;;  %v116_v33 = vld [vmem:[%s700_s2 + $0x28] sm:$0xff] }
   0x9   :  { %512 = vmatpush3.bf16.msra.mxu0 %v509_v5  ;;  %v525_v30 = vpack.c.bf16 %v122_v29, %v114_v28  ;;  %v124_v34 = vld [vmem:[%s700_s2 + $0x68] sm:$0xff]  ;;  %v527_v35 = vpack.c.bf16 %v121_v32, %v113_v31  ;;  %v115_v39 = vld [vmem:[%s700_s2 + $0x20] sm:$0xff] }
   0xa   :  { %514 = vmatprep.subr.bf16.mxu0 %v513_v13  ;;  %v529_v37 = vpack.c.bf16 %v124_v34, %v116_v33  ;;  %v123_v40 = vld [vmem:[%s700_s2 + $0x60] sm:$0xff] }
   0xb   :  { %526 = vmatprep.subr.bf16.mxu1 %v525_v30  ;;  %v531_v41 = vpack.c.bf16 %v123_v40, %v115_v39 }
   0xd   :  { %516 = vmatpush3.bf16.msra.mxu0 %v513_v13 }
   0xe   :  { %518 = vmatprep.subr.bf16.mxu0 %v517_v18 }
  0x11   :  { %520 = vmatpush3.bf16.msra.mxu0 %v517_v18 }
  0x12   :  { %500 = vmatprep.subr.msk.mxu0 %vm32_vm1, %v24_v19 }
  0x15   :  { %501 = vmatpush3.msk.msra.mxu0 %vm32_vm1, %v24_v19 }
  0x16   :  { %503 = vmatmul.mubr.msk.f32.vlgmr.msra.gmra.mrb[0].mxu0 %vm25_vm0, %v15_v25  ;;  %534 = vmatprep.subr.bf16.mxu0 %v533_v24 }
  0x17   :  { %536 = vmatpush1.bf16.msra.mxu0 %v535_v26  ;;  %429 = vmatprep.mubr.f32.mxu0 %v538_v27 }
  0xe9   :  { %v504_v36 = vpop.f32.mrb[0].mxu0 }
  0xea   :  { %v102_v38 = vpop.f32.mrb[1].mxu0 }
  0xeb   :  { %465 = vmatmul.mubr.msk.f32.vlgmr.msra.gmra.mrb[0].mxu1 %vm127_vm2, %v102_v38  ;;  %471 = vmatmul.mubr.msk.f32.vlgmr.msra.gmra.mrb[2].mxu0 %vm127_vm2, %v102_v38 }
  0xec   :  { %528 = vmatpush1.bf16.msra.mxu1 %v527_v35  ;;  %204 = vmatprep.mubr.f32.mxu1 %v538_v27 }
  0xed   :  { %435 = vmatprep.mubr.f32.mxu0 %v538_v27  ;;  %530 = vmatprep.subr.bf16.mxu1 %v529_v37 }
  0xef   :  { %466 = vmatmul.mubr.msk.f32.gmra.mrb[2].mxu1 %vm127_vm2, %v504_v36  ;;  %472 = vmatmul.mubr.msk.f32.gmra.mrb[4].mxu0 %vm127_vm2, %v504_v36 }
  0xf0   :  { %275 = vmatprep.mubr.f32.mxu1 %v538_v27 }
  0xf3   :  { %467 = vmatmul.mubr.msk.f32.vlgmr.msra.gmra.mrb[4].mxu1 %vm127_vm2, %v102_v38 }
  0xf4   :  { %532 = vmatpush1.bf16.msra.mxu1 %v531_v41  ;;  %281 = vmatprep.mubr.f32.mxu1 %v538_v27 }
  0xf7   :  { %468 = vmatmul.mubr.msk.f32.gmra.mrb[6].mxu1 %vm127_vm2, %v504_v36 }
  0xf8   :  { %352 = vmatprep.mubr.f32.mxu1 %v538_v27 }
  0xfb   :  { %469 = vmatmul.mubr.msk.f32.vlgmr.msra.gmra.mrb[8].mxu1 %vm127_vm2, %v102_v38 }
  0xfc   :  { %358 = vmatprep.mubr.f32.mxu1 %v538_v27 }
  0xff   :  { %470 = vmatmul.mubr.msk.f32.gmra.mrb[10].mxu1 %vm127_vm2, %v504_v36 }
 0x1be   :  { %v200_v42 = vpop.f32.mrb[0].mxu1  ;;  %v431_v43 = vpop.f32.mrb[2].mxu0 }
 0x1bf   :  { %442 = vst [vmem:[%s701_s3] sm:$0xff] %v200_v42  ;;  %448 = vst [vmem:[%s701_s3 + $0x30] sm:$0xff] %v431_v43  ;;  %v202_v44 = vpop.f32.mrb[1].mxu1  ;;  %v433_v45 = vpop.f32.mrb[3].mxu0 }
 0x1c0   :  { %443 = vst [vmem:[%s701_s3 + $0x8] sm:$0xff] %v202_v44  ;;  %449 = vst [vmem:[%s701_s3 + $0x38] sm:$0xff] %v433_v45 }
 0x1c2   :  { %v206_v46 = vpop.f32.mrb[2].mxu1  ;;  %v437_v47 = vpop.f32.mrb[4].mxu0 }
 0x1c3   :  { %450 = vst [vmem:[%s701_s3 + $0x40] sm:$0xff] %v206_v46  ;;  %456 = vst [vmem:[%s701_s3 + $0x70] sm:$0xff] %v437_v47  ;;  %v208_v48 = vpop.f32.mrb[3].mxu1  ;;  %v439_v49 = vpop.f32.mrb[5].mxu0 }
 0x1c4   :  { %451 = vst [vmem:[%s701_s3 + $0x48] sm:$0xff] %v208_v48  ;;  %457 = vst [vmem:[%s701_s3 + $0x78] sm:$0xff] %v439_v49 }
 0x1c6   :  { %v277_v50 = vpop.f32.mrb[4].mxu1 }
 0x1c7   :  { %444 = vst [vmem:[%s701_s3 + $0x10] sm:$0xff] %v277_v50  ;;  %v279_v51 = vpop.f32.mrb[5].mxu1 }
 0x1c8   :  { %445 = vst [vmem:[%s701_s3 + $0x18] sm:$0xff] %v279_v51 }
 0x1ca   :  { %v283_v52 = vpop.f32.mrb[6].mxu1 }
 0x1cb   :  { %452 = vst [vmem:[%s701_s3 + $0x50] sm:$0xff] %v283_v52  ;;  %v285_v53 = vpop.f32.mrb[7].mxu1 }
 0x1cc   :  { %453 = vst [vmem:[%s701_s3 + $0x58] sm:$0xff] %v285_v53 }
 0x1ce   :  { %v354_v54 = vpop.f32.mrb[8].mxu1 }
 0x1cf   :  { %446 = vst [vmem:[%s701_s3 + $0x20] sm:$0xff] %v354_v54  ;;  %v356_v55 = vpop.f32.mrb[9].mxu1 }
 0x1d0   :  { %447 = vst [vmem:[%s701_s3 + $0x28] sm:$0xff] %v356_v55 }
 0x1d2   :  { %v360_v56 = vpop.f32.mrb[10].mxu1 }
 0x1d3   :  { %454 = vst [vmem:[%s701_s3 + $0x60] sm:$0xff] %v360_v56  ;;  %v362_v57 = vpop.f32.mrb[11].mxu1 }
 0x1d4   :  { %455 = vst [vmem:[%s701_s3 + $0x68] sm:$0xff] %v362_v57 }

</bundles_post_ra>
